<compile_context>
chip_gen: v6e
topology: v6e:2x2x1
jax: 0.10.0
libtpu: 0.0.40
codegen_flags: <defaults>
</compile_context>

<pallas_src>
import functools

import jax
import jax.numpy as jnp
from jax.experimental import pallas as pl
from jax.experimental.pallas import tpu as pltpu


# ----------------------------- Pallas kernel --------------------------------

def _cutout_kernel(x_ref, wy_ref, wxT_ref, o_ref, rhs_ref):
    # x_ref  : (NC*H, W)        full image batch (grid invariant), bf16
    # wy_ref : (kt, cs, H)      row-interpolation matrices, bf16
    # wxT_ref: (kt, W, cs)      col-interpolation matrices (pre-transposed)
    # o_ref  : (kt, cs, NC*cs)  resized + clamped cutouts, f32 (lane dense)
    # rhs_ref: (H, NC*cs)       VMEM scratch for the stage-2 RHS, bf16
    nch, _ = x_ref.shape
    kt, cs, h = wy_ref.shape
    nc = nch // h

    x2d = x_ref[...]                                         # (NC*H, W)
    for kk in range(kt):                                     # small static unroll
        # Stage 1: one big matmul over all images/channels at once.
        t = jnp.dot(x2d, wxT_ref[kk],
                    preferred_element_type=jnp.float32)      # (NC*H, cs) f32
        t = t.astype(rhs_ref.dtype)
        # Relayout (NC, H, cs) -> (H, NC*cs) via static slice stores so that
        # stage 2 is a single lane-dense matmul.
        for n in range(nc):
            rhs_ref[:, n * cs:(n + 1) * cs] = t[n * h:(n + 1) * h, :]
        # Stage 2: (cs, H) @ (H, NC*cs) -> lane-dense output slab.
        out = jnp.dot(wy_ref[kk], rhs_ref[...],
                      preferred_element_type=jnp.float32)    # (cs, NC*cs) f32
        o_ref[kk] = jnp.clip(out, 0.0, 1.0).astype(o_ref.dtype)


def _run_cutout_kernel(x2d, wy_all, wxT_all, *, cut_size, nc, cuts_per_block):
    """x2d: (NC*H, W)  wy_all: (K, cs, H)  wxT_all: (K, W, cs)
    -> (K, cs, NC*cs) float32."""
    nch, w = x2d.shape
    h = nch // nc
    k = wy_all.shape[0]
    kt = cuts_per_block
    assert k % kt == 0
    cs = cut_size
    itemsize = jnp.dtype(x2d.dtype).itemsize

    # Explicit VMEM budget: x (double-buffered), weight/output blocks
    # (double-buffered), scratch and the f32 stage-1 intermediate.
    est = (2 * (nch * w * itemsize
                + kt * (cs * h + w * cs) * itemsize
                + kt * cs * nc * cs * 4)
           + h * nc * cs * itemsize
           + 2 * nch * cs * 4)
    vmem_limit = int(max(32 * 1024 * 1024, est * 2))

    return pl.pallas_call(
        _cutout_kernel,
        out_shape=jax.ShapeDtypeStruct((k, cs, nc * cs), jnp.float32),
        grid_spec=pltpu.PrefetchScalarGridSpec(
            num_scalar_prefetch=0,
            grid=(k // kt,),
            in_specs=[
                pl.BlockSpec((nch, w), lambda i: (0, 0)),        # invariant
                pl.BlockSpec((kt, cs, h), lambda i: (i, 0, 0)),
                pl.BlockSpec((kt, w, cs), lambda i: (i, 0, 0)),
            ],
            out_specs=pl.BlockSpec((kt, cs, nc * cs), lambda i: (i, 0, 0)),
            scratch_shapes=[pltpu.VMEM((h, nc * cs), x2d.dtype)],
        ),
        compiler_params=pltpu.CompilerParams(
            dimension_semantics=("parallel",),
            vmem_limit_bytes=vmem_limit),
    )(x2d, wy_all, wxT_all)


# ------------------------------ JAX glue -------------------------------------

def _cubic(x, A=-0.75):
    """PyTorch bicubic convolution kernel (A = -0.75)."""
    ax = jnp.abs(x)
    ax2 = ax * ax
    ax3 = ax2 * ax
    w_near = (A + 2.0) * ax3 - (A + 3.0) * ax2 + 1.0
    w_far = A * ax3 - 5.0 * A * ax2 + 8.0 * A * ax - 4.0 * A
    return jnp.where(ax <= 1.0, w_near, jnp.where(ax < 2.0, w_far, 0.0))


def _build_weight_matrix(size, off, *, full_len, cut_size, align_corners=True):
    """(cut_size, full_len) matrix: crop [off, off+size) then bicubic resize
    to cut_size.  Built with a scatter-add (no one-hot intermediate)."""
    j = jnp.arange(cut_size, dtype=jnp.float32)
    sizef = size.astype(jnp.float32)
    if align_corners:
        if cut_size > 1:
            src = j * ((sizef - 1.0) / float(cut_size - 1))
        else:
            src = jnp.zeros_like(j)
    else:
        src = (j + 0.5) * (sizef / float(cut_size)) - 0.5
    in0 = jnp.floor(src)
    t = src - in0
    in0 = in0.astype(jnp.int32)
    taps = in0[:, None] + jnp.arange(-1, 3, dtype=jnp.int32)     # (cs, 4)
    taps = jnp.clip(taps, 0, size - 1)                           # border clamp
    w = jnp.stack([_cubic(t + 1.0), _cubic(t),
                   _cubic(1.0 - t), _cubic(2.0 - t)], axis=1)    # (cs, 4)
    rows = jnp.broadcast_to(
        jnp.arange(cut_size, dtype=jnp.int32)[:, None], (cut_size, 4))
    cols = off + taps                                            # (cs, 4)
    mat = jnp.zeros((cut_size, full_len), jnp.float32)
    return mat.at[rows, cols].add(w)                             # (cs, L)


def _sample_cut_params(key, number_of_cuts, side_y, side_x, cut_size, cut_pow):
    max_size = min(side_x, side_y)
    min_size = min(side_x, side_y, cut_size)
    k_size, k_offy, k_offx = jax.random.split(key, 3)
    u = jax.random.uniform(k_size, (number_of_cuts,))
    sizes = jnp.floor(u ** cut_pow * (max_size - min_size) + min_size
                      ).astype(jnp.int32)
    uy = jax.random.uniform(k_offy, (number_of_cuts,))
    ux = jax.random.uniform(k_offx, (number_of_cuts,))
    offy = jnp.floor(uy * (side_y - sizes + 1).astype(jnp.float32)
                     ).astype(jnp.int32)
    offx = jnp.floor(ux * (side_x - sizes + 1).astype(jnp.float32)
                     ).astype(jnp.int32)
    return sizes, offy, offx


def _build_all_weights(sizes, offy, offx, side_y, side_x, cut_size,
                       align_corners):
    build_y = functools.partial(_build_weight_matrix, full_len=side_y,
                                cut_size=cut_size, align_corners=align_corners)
    build_x = functools.partial(_build_weight_matrix, full_len=side_x,
                                cut_size=cut_size, align_corners=align_corners)
    wy_all = jax.vmap(build_y)(sizes, offy)      # (K, cs, H) f32
    wx_all = jax.vmap(build_x)(sizes, offx)      # (K, cs, W) f32
    return wy_all, wx_all


def _pick_cuts_per_block(k, cut_size, nc, h, w, budget_bytes=8 * 1024 * 1024):
    """Largest divisor of k (<= 8) whose per-step weight+output footprint fits
    a small VMEM budget; amortizes grid-step overhead for small cuts."""
    per_cut = 2 * (cut_size * h + w * cut_size) + 4 * cut_size * nc * cut_size
    best = 1
    for d in range(1, min(k, 8) + 1):
        if k % d == 0 and d * per_cut <= budget_bytes:
            best = d
    return best


def make_cutouts(x, *, cut_size, number_of_cuts, cut_pow=1.0, key=None,
                 compute_dtype=jnp.bfloat16, align_corners=True):
    """JAX/Pallas equivalent of MakeCutouts.forward.

    x: (N, C, H, W) float32 in [0, 1].  Returns (number_of_cuts*N, C, cs, cs).
    """
    if key is None:
        key = jax.random.PRNGKey(0)
    n, c, side_y, side_x = x.shape
    nc = n * c

    sizes, offy, offx = _sample_cut_params(
        key, number_of_cuts, side_y, side_x, cut_size, cut_pow)
    wy_all, wx_all = _build_all_weights(
        sizes, offy, offx, side_y, side_x, cut_size, align_corners)

    wy_all = wy_all.astype(compute_dtype)                       # (K, cs, H)
    wxT_all = jnp.transpose(wx_all, (0, 2, 1)).astype(compute_dtype)  # (K, W, cs)
    x2d = x.reshape(nc * side_y, side_x).astype(compute_dtype)  # (NC*H, W)

    kt = _pick_cuts_per_block(number_of_cuts, cut_size, nc, side_y, side_x)
    out = _run_cutout_kernel(x2d, wy_all, wxT_all, cut_size=cut_size,
                             nc=nc, cuts_per_block=kt)          # (K, cs, NC*cs)

    # (K, cs, N, C, cs) -> (K, N, C, cs, cs); torch.cat(cutouts, dim=0) puts
    # the cut index as the major batch axis.
    out = out.reshape(number_of_cuts, cut_size, n, c, cut_size)
    out = jnp.transpose(out, (0, 2, 3, 1, 4))
    return out.reshape(number_of_cuts * n, c, cut_size, cut_size)


def _reference_make_cutouts(x, *, cut_size, number_of_cuts, cut_pow, key,
                            align_corners=True):
    """Pure-JAX (f32 einsum) reference using the same weights / RNG draws."""
    n, c, side_y, side_x = x.shape
    sizes, offy, offx = _sample_cut_params(
        key, number_of_cuts, side_y, side_x, cut_size, cut_pow)
    wy_all, wx_all = _build_all_weights(
        sizes, offy, offx, side_y, side_x, cut_size, align_corners)
    ref = jnp.einsum('kah,nchw,kbw->kncab',
                     wy_all, x.astype(jnp.float32), wx_all)
    ref = jnp.clip(ref, 0.0, 1.0)
    return ref.reshape(number_of_cuts * n, c, cut_size, cut_size)


# --------------------------------- main --------------------------------------

if __name__ == "__main__":
    key = jax.random.PRNGKey(0)
    k_img, k_cuts = jax.random.split(key)

    N, C, H, W = 2, 3, 16, 16
    CUT_SIZE, NUM_CUTS, CUT_POW = 8, 4, 1.0

    x = jax.random.uniform(k_img, (N, C, H, W), dtype=jnp.float32)

    out = make_cutouts(x, cut_size=CUT_SIZE, number_of_cuts=NUM_CUTS,
                       cut_pow=CUT_POW, key=k_cuts)
    out = jax.block_until_ready(out)

    assert out.shape == (NUM_CUTS * N, C, CUT_SIZE, CUT_SIZE), out.shape
    assert out.dtype == jnp.float32
    assert bool(jnp.all(out >= 0.0)) and bool(jnp.all(out <= 1.0))

    ref = _reference_make_cutouts(x, cut_size=CUT_SIZE,
                                  number_of_cuts=NUM_CUTS,
                                  cut_pow=CUT_POW, key=k_cuts)
    max_err = float(jnp.max(jnp.abs(out - ref)))
    assert max_err < 0.1, f"max abs error vs reference: {max_err}"

    print("KERNEL_OK")
</pallas_src>

<mosaic_0001>
module attributes {stable_mosaic.version = 11 : i64} {
  func.func @_cutout_kernel(%arg0: i32, %arg1: memref<96x16xbf16, #tpu.memory_space<vmem>>, %arg2: memref<4x8x16xbf16, #tpu.memory_space<vmem>>, %arg3: memref<4x16x8xbf16, #tpu.memory_space<vmem>>, %arg4: memref<4x8x48xf32, #tpu.memory_space<vmem>>, %arg5: memref<16x48xbf16, #tpu.memory_space<vmem>>) attributes {dimension_semantics = [#tpu.dimension_semantics<parallel>], iteration_bounds = array<i64: 1>, scalar_prefetch = 0 : i64, scratch_operands = 1 : i64, tpu.core_type = #tpu.core_type<tc>, window_params = [{pipeline_mode = #tpu.pipeline_mode<synchronous>, transform_indices = @transform_0, window_bounds = array<i64: 96, 16>}, {transform_indices = @transform_1, window_bounds = array<i64: 4, 8, 16>}, {transform_indices = @transform_2, window_bounds = array<i64: 4, 16, 8>}, {transform_indices = @transform_3, window_bounds = array<i64: 4, 8, 48>}]} {
    %c0 = arith.constant 0 : index
    %c0_0 = arith.constant 0 : index
    %0 = vector.load %arg1[%c0, %c0_0] : memref<96x16xbf16, #tpu.memory_space<vmem>>, vector<96x16xbf16>
    %c0_1 = arith.constant 0 : index
    %c0_2 = arith.constant 0 : index
    %c0_3 = arith.constant 0 : index
    %1 = vector.load %arg3[%c0_1, %c0_2, %c0_3] : memref<4x16x8xbf16, #tpu.memory_space<vmem>>, vector<1x16x8xbf16>
    %2 = vector.shape_cast %1 : vector<1x16x8xbf16> to vector<16x8xbf16>
    %cst = arith.constant dense<0.000000e+00> : vector<96x8xf32>
    %3 = tpu.matmul %0, %2, %cst {dimension_numbers = #tpu.dot_dimension_numbers<[1], [0], [0], [1], [0, 0, 1, 1], [], []>} : vector<96x16xbf16>, vector<16x8xbf16>, vector<96x8xf32> -> vector<96x8xf32>
    %4 = arith.truncf %3 : vector<96x8xf32> to vector<96x8xbf16>
    %5 = vector.extract_strided_slice %4 {offsets = [0, 0], sizes = [16, 8], strides = [1, 1]} : vector<96x8xbf16> to vector<16x8xbf16>
    %c0_4 = arith.constant 0 : index
    %c0_5 = arith.constant 0 : index
    %6 = vector.load %arg5[%c0_4, %c0_5] : memref<16x48xbf16, #tpu.memory_space<vmem>>, vector<16x8xbf16>
    tpu.vector_store %arg5[%c0_4, %c0_5], %5 {strides = array<i32>} : memref<16x48xbf16, #tpu.memory_space<vmem>>, vector<16x8xbf16>,
    %7 = vector.extract_strided_slice %4 {offsets = [16, 0], sizes = [16, 8], strides = [1, 1]} : vector<96x8xbf16> to vector<16x8xbf16>
    %c0_6 = arith.constant 0 : index
    %c8 = arith.constant 8 : index
    %8 = vector.load %arg5[%c0_6, %c8] : memref<16x48xbf16, #tpu.memory_space<vmem>>, vector<16x8xbf16>
    tpu.vector_store %arg5[%c0_6, %c8], %7 {strides = array<i32>} : memref<16x48xbf16, #tpu.memory_space<vmem>>, vector<16x8xbf16>,
    %9 = vector.extract_strided_slice %4 {offsets = [32, 0], sizes = [16, 8], strides = [1, 1]} : vector<96x8xbf16> to vector<16x8xbf16>
    %c0_7 = arith.constant 0 : index
    %c16 = arith.constant 16 : index
    %10 = vector.load %arg5[%c0_7, %c16] : memref<16x48xbf16, #tpu.memory_space<vmem>>, vector<16x8xbf16>
    tpu.vector_store %arg5[%c0_7, %c16], %9 {strides = array<i32>} : memref<16x48xbf16, #tpu.memory_space<vmem>>, vector<16x8xbf16>,
    %11 = vector.extract_strided_slice %4 {offsets = [48, 0], sizes = [16, 8], strides = [1, 1]} : vector<96x8xbf16> to vector<16x8xbf16>
    %c0_8 = arith.constant 0 : index
    %c24 = arith.constant 24 : index
    %12 = vector.load %arg5[%c0_8, %c24] : memref<16x48xbf16, #tpu.memory_space<vmem>>, vector<16x8xbf16>
    tpu.vector_store %arg5[%c0_8, %c24], %11 {strides = array<i32>} : memref<16x48xbf16, #tpu.memory_space<vmem>>, vector<16x8xbf16>,
    %13 = vector.extract_strided_slice %4 {offsets = [64, 0], sizes = [16, 8], strides = [1, 1]} : vector<96x8xbf16> to vector<16x8xbf16>
    %c0_9 = arith.constant 0 : index
    %c32 = arith.constant 32 : index
    %14 = vector.load %arg5[%c0_9, %c32] : memref<16x48xbf16, #tpu.memory_space<vmem>>, vector<16x8xbf16>
    tpu.vector_store %arg5[%c0_9, %c32], %13 {strides = array<i32>} : memref<16x48xbf16, #tpu.memory_space<vmem>>, vector<16x8xbf16>,
    %15 = vector.extract_strided_slice %4 {offsets = [80, 0], sizes = [16, 8], strides = [1, 1]} : vector<96x8xbf16> to vector<16x8xbf16>
    %c0_10 = arith.constant 0 : index
    %c40 = arith.constant 40 : index
    %16 = vector.load %arg5[%c0_10, %c40] : memref<16x48xbf16, #tpu.memory_space<vmem>>, vector<16x8xbf16>
    tpu.vector_store %arg5[%c0_10, %c40], %15 {strides = array<i32>} : memref<16x48xbf16, #tpu.memory_space<vmem>>, vector<16x8xbf16>,
    %c0_11 = arith.constant 0 : index
    %c0_12 = arith.constant 0 : index
    %c0_13 = arith.constant 0 : index
    %17 = vector.load %arg2[%c0_11, %c0_12, %c0_13] : memref<4x8x16xbf16, #tpu.memory_space<vmem>>, vector<1x8x16xbf16>
    %18 = vector.shape_cast %17 : vector<1x8x16xbf16> to vector<8x16xbf16>
    %c0_14 = arith.constant 0 : index
    %c0_15 = arith.constant 0 : index
    %19 = vector.load %arg5[%c0_14, %c0_15] : memref<16x48xbf16, #tpu.memory_space<vmem>>, vector<16x48xbf16>
    %cst_16 = arith.constant dense<0.000000e+00> : vector<8x48xf32>
    %20 = tpu.matmul %18, %19, %cst_16 {dimension_numbers = #tpu.dot_dimension_numbers<[1], [0], [0], [1], [0, 0, 1, 1], [], []>} : vector<8x16xbf16>, vector<16x48xbf16>, vector<8x48xf32> -> vector<8x48xf32>
    %cst_17 = arith.constant 0.000000e+00 : f32
    %cst_18 = arith.constant 1.000000e+00 : f32
    %21 = vector.broadcast %cst_17 : f32 to vector<8x48xf32>
    %22 = arith.maximumf %21, %20 : vector<8x48xf32>
    %23 = vector.broadcast %cst_18 : f32 to vector<8x48xf32>
    %24 = arith.minimumf %23, %22 : vector<8x48xf32>
    %c0_19 = arith.constant 0 : index
    %c0_20 = arith.constant 0 : index
    %c0_21 = arith.constant 0 : index
    %25 = vector.load %arg4[%c0_19, %c0_20, %c0_21] : memref<4x8x48xf32, #tpu.memory_space<vmem>>, vector<1x8x48xf32>
    %26 = vector.shape_cast %25 : vector<1x8x48xf32> to vector<8x48xf32>
    %27 = vector.shape_cast %24 : vector<8x48xf32> to vector<1x8x48xf32>
    tpu.vector_store %arg4[%c0_19, %c0_20, %c0_21], %27 {strides = array<i32>} : memref<4x8x48xf32, #tpu.memory_space<vmem>>, vector<1x8x48xf32>,
    %c1 = arith.constant 1 : index
    %c0_22 = arith.constant 0 : index
    %c0_23 = arith.constant 0 : index
    %28 = vector.load %arg3[%c1, %c0_22, %c0_23] : memref<4x16x8xbf16, #tpu.memory_space<vmem>>, vector<1x16x8xbf16>
    %29 = vector.shape_cast %28 : vector<1x16x8xbf16> to vector<16x8xbf16>
    %cst_24 = arith.constant dense<0.000000e+00> : vector<96x8xf32>
    %30 = tpu.matmul %0, %29, %cst_24 {dimension_numbers = #tpu.dot_dimension_numbers<[1], [0], [0], [1], [0, 0, 1, 1], [], []>} : vector<96x16xbf16>, vector<16x8xbf16>, vector<96x8xf32> -> vector<96x8xf32>
    %31 = arith.truncf %30 : vector<96x8xf32> to vector<96x8xbf16>
    %32 = vector.extract_strided_slice %31 {offsets = [0, 0], sizes = [16, 8], strides = [1, 1]} : vector<96x8xbf16> to vector<16x8xbf16>
    %c0_25 = arith.constant 0 : index
    %c0_26 = arith.constant 0 : index
    %33 = vector.load %arg5[%c0_25, %c0_26] : memref<16x48xbf16, #tpu.memory_space<vmem>>, vector<16x8xbf16>
    tpu.vector_store %arg5[%c0_25, %c0_26], %32 {strides = array<i32>} : memref<16x48xbf16, #tpu.memory_space<vmem>>, vector<16x8xbf16>,
    %34 = vector.extract_strided_slice %31 {offsets = [16, 0], sizes = [16, 8], strides = [1, 1]} : vector<96x8xbf16> to vector<16x8xbf16>
    %c0_27 = arith.constant 0 : index
    %c8_28 = arith.constant 8 : index
    %35 = vector.load %arg5[%c0_27, %c8_28] : memref<16x48xbf16, #tpu.memory_space<vmem>>, vector<16x8xbf16>
    tpu.vector_store %arg5[%c0_27, %c8_28], %34 {strides = array<i32>} : memref<16x48xbf16, #tpu.memory_space<vmem>>, vector<16x8xbf16>,
    %36 = vector.extract_strided_slice %31 {offsets = [32, 0], sizes = [16, 8], strides = [1, 1]} : vector<96x8xbf16> to vector<16x8xbf16>
    %c0_29 = arith.constant 0 : index
    %c16_30 = arith.constant 16 : index
    %37 = vector.load %arg5[%c0_29, %c16_30] : memref<16x48xbf16, #tpu.memory_space<vmem>>, vector<16x8xbf16>
    tpu.vector_store %arg5[%c0_29, %c16_30], %36 {strides = array<i32>} : memref<16x48xbf16, #tpu.memory_space<vmem>>, vector<16x8xbf16>,
    %38 = vector.extract_strided_slice %31 {offsets = [48, 0], sizes = [16, 8], strides = [1, 1]} : vector<96x8xbf16> to vector<16x8xbf16>
    %c0_31 = arith.constant 0 : index
    %c24_32 = arith.constant 24 : index
    %39 = vector.load %arg5[%c0_31, %c24_32] : memref<16x48xbf16, #tpu.memory_space<vmem>>, vector<16x8xbf16>
    tpu.vector_store %arg5[%c0_31, %c24_32], %38 {strides = array<i32>} : memref<16x48xbf16, #tpu.memory_space<vmem>>, vector<16x8xbf16>,
    %40 = vector.extract_strided_slice %31 {offsets = [64, 0], sizes = [16, 8], strides = [1, 1]} : vector<96x8xbf16> to vector<16x8xbf16>
    %c0_33 = arith.constant 0 : index
    %c32_34 = arith.constant 32 : index
    %41 = vector.load %arg5[%c0_33, %c32_34] : memref<16x48xbf16, #tpu.memory_space<vmem>>, vector<16x8xbf16>
    tpu.vector_store %arg5[%c0_33, %c32_34], %40 {strides = array<i32>} : memref<16x48xbf16, #tpu.memory_space<vmem>>, vector<16x8xbf16>,
    %42 = vector.extract_strided_slice %31 {offsets = [80, 0], sizes = [16, 8], strides = [1, 1]} : vector<96x8xbf16> to vector<16x8xbf16>
    %c0_35 = arith.constant 0 : index
    %c40_36 = arith.constant 40 : index
    %43 = vector.load %arg5[%c0_35, %c40_36] : memref<16x48xbf16, #tpu.memory_space<vmem>>, vector<16x8xbf16>
    tpu.vector_store %arg5[%c0_35, %c40_36], %42 {strides = array<i32>} : memref<16x48xbf16, #tpu.memory_space<vmem>>, vector<16x8xbf16>,
    %c1_37 = arith.constant 1 : index
    %c0_38 = arith.constant 0 : index
    %c0_39 = arith.constant 0 : index
    %44 = vector.load %arg2[%c1_37, %c0_38, %c0_39] : memref<4x8x16xbf16, #tpu.memory_space<vmem>>, vector<1x8x16xbf16>
    %45 = vector.shape_cast %44 : vector<1x8x16xbf16> to vector<8x16xbf16>
    %c0_40 = arith.constant 0 : index
    %c0_41 = arith.constant 0 : index
    %46 = vector.load %arg5[%c0_40, %c0_41] : memref<16x48xbf16, #tpu.memory_space<vmem>>, vector<16x48xbf16>
    %cst_42 = arith.constant dense<0.000000e+00> : vector<8x48xf32>
    %47 = tpu.matmul %45, %46, %cst_42 {dimension_numbers = #tpu.dot_dimension_numbers<[1], [0], [0], [1], [0, 0, 1, 1], [], []>} : vector<8x16xbf16>, vector<16x48xbf16>, vector<8x48xf32> -> vector<8x48xf32>
    %cst_43 = arith.constant 0.000000e+00 : f32
    %cst_44 = arith.constant 1.000000e+00 : f32
    %48 = vector.broadcast %cst_43 : f32 to vector<8x48xf32>
    %49 = arith.maximumf %48, %47 : vector<8x48xf32>
    %50 = vector.broadcast %cst_44 : f32 to vector<8x48xf32>
    %51 = arith.minimumf %50, %49 : vector<8x48xf32>
    %c1_45 = arith.constant 1 : index
    %c0_46 = arith.constant 0 : index
    %c0_47 = arith.constant 0 : index
    %52 = vector.load %arg4[%c1_45, %c0_46, %c0_47] : memref<4x8x48xf32, #tpu.memory_space<vmem>>, vector<1x8x48xf32>
    %53 = vector.shape_cast %52 : vector<1x8x48xf32> to vector<8x48xf32>
    %54 = vector.shape_cast %51 : vector<8x48xf32> to vector<1x8x48xf32>
    tpu.vector_store %arg4[%c1_45, %c0_46, %c0_47], %54 {strides = array<i32>} : memref<4x8x48xf32, #tpu.memory_space<vmem>>, vector<1x8x48xf32>,
    %c2 = arith.constant 2 : index
    %c0_48 = arith.constant 0 : index
    %c0_49 = arith.constant 0 : index
    %55 = vector.load %arg3[%c2, %c0_48, %c0_49] : memref<4x16x8xbf16, #tpu.memory_space<vmem>>, vector<1x16x8xbf16>
    %56 = vector.shape_cast %55 : vector<1x16x8xbf16> to vector<16x8xbf16>
    %cst_50 = arith.constant dense<0.000000e+00> : vector<96x8xf32>
    %57 = tpu.matmul %0, %56, %cst_50 {dimension_numbers = #tpu.dot_dimension_numbers<[1], [0], [0], [1], [0, 0, 1, 1], [], []>} : vector<96x16xbf16>, vector<16x8xbf16>, vector<96x8xf32> -> vector<96x8xf32>
    %58 = arith.truncf %57 : vector<96x8xf32> to vector<96x8xbf16>
    %59 = vector.extract_strided_slice %58 {offsets = [0, 0], sizes = [16, 8], strides = [1, 1]} : vector<96x8xbf16> to vector<16x8xbf16>
    %c0_51 = arith.constant 0 : index
    %c0_52 = arith.constant 0 : index
    %60 = vector.load %arg5[%c0_51, %c0_52] : memref<16x48xbf16, #tpu.memory_space<vmem>>, vector<16x8xbf16>
    tpu.vector_store %arg5[%c0_51, %c0_52], %59 {strides = array<i32>} : memref<16x48xbf16, #tpu.memory_space<vmem>>, vector<16x8xbf16>,
    %61 = vector.extract_strided_slice %58 {offsets = [16, 0], sizes = [16, 8], strides = [1, 1]} : vector<96x8xbf16> to vector<16x8xbf16>
    %c0_53 = arith.constant 0 : index
    %c8_54 = arith.constant 8 : index
    %62 = vector.load %arg5[%c0_53, %c8_54] : memref<16x48xbf16, #tpu.memory_space<vmem>>, vector<16x8xbf16>
    tpu.vector_store %arg5[%c0_53, %c8_54], %61 {strides = array<i32>} : memref<16x48xbf16, #tpu.memory_space<vmem>>, vector<16x8xbf16>,
    %63 = vector.extract_strided_slice %58 {offsets = [32, 0], sizes = [16, 8], strides = [1, 1]} : vector<96x8xbf16> to vector<16x8xbf16>
    %c0_55 = arith.constant 0 : index
    %c16_56 = arith.constant 16 : index
    %64 = vector.load %arg5[%c0_55, %c16_56] : memref<16x48xbf16, #tpu.memory_space<vmem>>, vector<16x8xbf16>
    tpu.vector_store %arg5[%c0_55, %c16_56], %63 {strides = array<i32>} : memref<16x48xbf16, #tpu.memory_space<vmem>>, vector<16x8xbf16>,
    %65 = vector.extract_strided_slice %58 {offsets = [48, 0], sizes = [16, 8], strides = [1, 1]} : vector<96x8xbf16> to vector<16x8xbf16>
    %c0_57 = arith.constant 0 : index
    %c24_58 = arith.constant 24 : index
    %66 = vector.load %arg5[%c0_57, %c24_58] : memref<16x48xbf16, #tpu.memory_space<vmem>>, vector<16x8xbf16>
    tpu.vector_store %arg5[%c0_57, %c24_58], %65 {strides = array<i32>} : memref<16x48xbf16, #tpu.memory_space<vmem>>, vector<16x8xbf16>,
    %67 = vector.extract_strided_slice %58 {offsets = [64, 0], sizes = [16, 8], strides = [1, 1]} : vector<96x8xbf16> to vector<16x8xbf16>
    %c0_59 = arith.constant 0 : index
    %c32_60 = arith.constant 32 : index
    %68 = vector.load %arg5[%c0_59, %c32_60] : memref<16x48xbf16, #tpu.memory_space<vmem>>, vector<16x8xbf16>
    tpu.vector_store %arg5[%c0_59, %c32_60], %67 {strides = array<i32>} : memref<16x48xbf16, #tpu.memory_space<vmem>>, vector<16x8xbf16>,
    %69 = vector.extract_strided_slice %58 {offsets = [80, 0], sizes = [16, 8], strides = [1, 1]} : vector<96x8xbf16> to vector<16x8xbf16>
    %c0_61 = arith.constant 0 : index
    %c40_62 = arith.constant 40 : index
    %70 = vector.load %arg5[%c0_61, %c40_62] : memref<16x48xbf16, #tpu.memory_space<vmem>>, vector<16x8xbf16>
    tpu.vector_store %arg5[%c0_61, %c40_62], %69 {strides = array<i32>} : memref<16x48xbf16, #tpu.memory_space<vmem>>, vector<16x8xbf16>,
    %c2_63 = arith.constant 2 : index
    %c0_64 = arith.constant 0 : index
    %c0_65 = arith.constant 0 : index
    %71 = vector.load %arg2[%c2_63, %c0_64, %c0_65] : memref<4x8x16xbf16, #tpu.memory_space<vmem>>, vector<1x8x16xbf16>
    %72 = vector.shape_cast %71 : vector<1x8x16xbf16> to vector<8x16xbf16>
    %c0_66 = arith.constant 0 : index
    %c0_67 = arith.constant 0 : index
    %73 = vector.load %arg5[%c0_66, %c0_67] : memref<16x48xbf16, #tpu.memory_space<vmem>>, vector<16x48xbf16>
    %cst_68 = arith.constant dense<0.000000e+00> : vector<8x48xf32>
    %74 = tpu.matmul %72, %73, %cst_68 {dimension_numbers = #tpu.dot_dimension_numbers<[1], [0], [0], [1], [0, 0, 1, 1], [], []>} : vector<8x16xbf16>, vector<16x48xbf16>, vector<8x48xf32> -> vector<8x48xf32>
    %cst_69 = arith.constant 0.000000e+00 : f32
    %cst_70 = arith.constant 1.000000e+00 : f32
    %75 = vector.broadcast %cst_69 : f32 to vector<8x48xf32>
    %76 = arith.maximumf %75, %74 : vector<8x48xf32>
    %77 = vector.broadcast %cst_70 : f32 to vector<8x48xf32>
    %78 = arith.minimumf %77, %76 : vector<8x48xf32>
    %c2_71 = arith.constant 2 : index
    %c0_72 = arith.constant 0 : index
    %c0_73 = arith.constant 0 : index
    %79 = vector.load %arg4[%c2_71, %c0_72, %c0_73] : memref<4x8x48xf32, #tpu.memory_space<vmem>>, vector<1x8x48xf32>
    %80 = vector.shape_cast %79 : vector<1x8x48xf32> to vector<8x48xf32>
    %81 = vector.shape_cast %78 : vector<8x48xf32> to vector<1x8x48xf32>
    tpu.vector_store %arg4[%c2_71, %c0_72, %c0_73], %81 {strides = array<i32>} : memref<4x8x48xf32, #tpu.memory_space<vmem>>, vector<1x8x48xf32>,
    %c3 = arith.constant 3 : index
    %c0_74 = arith.constant 0 : index
    %c0_75 = arith.constant 0 : index
    %82 = vector.load %arg3[%c3, %c0_74, %c0_75] : memref<4x16x8xbf16, #tpu.memory_space<vmem>>, vector<1x16x8xbf16>
    %83 = vector.shape_cast %82 : vector<1x16x8xbf16> to vector<16x8xbf16>
    %cst_76 = arith.constant dense<0.000000e+00> : vector<96x8xf32>
    %84 = tpu.matmul %0, %83, %cst_76 {dimension_numbers = #tpu.dot_dimension_numbers<[1], [0], [0], [1], [0, 0, 1, 1], [], []>} : vector<96x16xbf16>, vector<16x8xbf16>, vector<96x8xf32> -> vector<96x8xf32>
    %85 = arith.truncf %84 : vector<96x8xf32> to vector<96x8xbf16>
    %86 = vector.extract_strided_slice %85 {offsets = [0, 0], sizes = [16, 8], strides = [1, 1]} : vector<96x8xbf16> to vector<16x8xbf16>
    %c0_77 = arith.constant 0 : index
    %c0_78 = arith.constant 0 : index
    %87 = vector.load %arg5[%c0_77, %c0_78] : memref<16x48xbf16, #tpu.memory_space<vmem>>, vector<16x8xbf16>
    tpu.vector_store %arg5[%c0_77, %c0_78], %86 {strides = array<i32>} : memref<16x48xbf16, #tpu.memory_space<vmem>>, vector<16x8xbf16>,
    %88 = vector.extract_strided_slice %85 {offsets = [16, 0], sizes = [16, 8], strides = [1, 1]} : vector<96x8xbf16> to vector<16x8xbf16>
    %c0_79 = arith.constant 0 : index
    %c8_80 = arith.constant 8 : index
    %89 = vector.load %arg5[%c0_79, %c8_80] : memref<16x48xbf16, #tpu.memory_space<vmem>>, vector<16x8xbf16>
    tpu.vector_store %arg5[%c0_79, %c8_80], %88 {strides = array<i32>} : memref<16x48xbf16, #tpu.memory_space<vmem>>, vector<16x8xbf16>,
    %90 = vector.extract_strided_slice %85 {offsets = [32, 0], sizes = [16, 8], strides = [1, 1]} : vector<96x8xbf16> to vector<16x8xbf16>
    %c0_81 = arith.constant 0 : index
    %c16_82 = arith.constant 16 : index
    %91 = vector.load %arg5[%c0_81, %c16_82] : memref<16x48xbf16, #tpu.memory_space<vmem>>, vector<16x8xbf16>
    tpu.vector_store %arg5[%c0_81, %c16_82], %90 {strides = array<i32>} : memref<16x48xbf16, #tpu.memory_space<vmem>>, vector<16x8xbf16>,
    %92 = vector.extract_strided_slice %85 {offsets = [48, 0], sizes = [16, 8], strides = [1, 1]} : vector<96x8xbf16> to vector<16x8xbf16>
    %c0_83 = arith.constant 0 : index
    %c24_84 = arith.constant 24 : index
    %93 = vector.load %arg5[%c0_83, %c24_84] : memref<16x48xbf16, #tpu.memory_space<vmem>>, vector<16x8xbf16>
    tpu.vector_store %arg5[%c0_83, %c24_84], %92 {strides = array<i32>} : memref<16x48xbf16, #tpu.memory_space<vmem>>, vector<16x8xbf16>,
    %94 = vector.extract_strided_slice %85 {offsets = [64, 0], sizes = [16, 8], strides = [1, 1]} : vector<96x8xbf16> to vector<16x8xbf16>
    %c0_85 = arith.constant 0 : index
    %c32_86 = arith.constant 32 : index
    %95 = vector.load %arg5[%c0_85, %c32_86] : memref<16x48xbf16, #tpu.memory_space<vmem>>, vector<16x8xbf16>
    tpu.vector_store %arg5[%c0_85, %c32_86], %94 {strides = array<i32>} : memref<16x48xbf16, #tpu.memory_space<vmem>>, vector<16x8xbf16>,
    %96 = vector.extract_strided_slice %85 {offsets = [80, 0], sizes = [16, 8], strides = [1, 1]} : vector<96x8xbf16> to vector<16x8xbf16>
    %c0_87 = arith.constant 0 : index
    %c40_88 = arith.constant 40 : index
    %97 = vector.load %arg5[%c0_87, %c40_88] : memref<16x48xbf16, #tpu.memory_space<vmem>>, vector<16x8xbf16>
    tpu.vector_store %arg5[%c0_87, %c40_88], %96 {strides = array<i32>} : memref<16x48xbf16, #tpu.memory_space<vmem>>, vector<16x8xbf16>,
    %c3_89 = arith.constant 3 : index
    %c0_90 = arith.constant 0 : index
    %c0_91 = arith.constant 0 : index
    %98 = vector.load %arg2[%c3_89, %c0_90, %c0_91] : memref<4x8x16xbf16, #tpu.memory_space<vmem>>, vector<1x8x16xbf16>
    %99 = vector.shape_cast %98 : vector<1x8x16xbf16> to vector<8x16xbf16>
    %c0_92 = arith.constant 0 : index
    %c0_93 = arith.constant 0 : index
    %100 = vector.load %arg5[%c0_92, %c0_93] : memref<16x48xbf16, #tpu.memory_space<vmem>>, vector<16x48xbf16>
    %cst_94 = arith.constant dense<0.000000e+00> : vector<8x48xf32>
    %101 = tpu.matmul %99, %100, %cst_94 {dimension_numbers = #tpu.dot_dimension_numbers<[1], [0], [0], [1], [0, 0, 1, 1], [], []>} : vector<8x16xbf16>, vector<16x48xbf16>, vector<8x48xf32> -> vector<8x48xf32>
    %cst_95 = arith.constant 0.000000e+00 : f32
    %cst_96 = arith.constant 1.000000e+00 : f32
    %102 = vector.broadcast %cst_95 : f32 to vector<8x48xf32>
    %103 = arith.maximumf %102, %101 : vector<8x48xf32>
    %104 = vector.broadcast %cst_96 : f32 to vector<8x48xf32>
    %105 = arith.minimumf %104, %103 : vector<8x48xf32>
    %c3_97 = arith.constant 3 : index
    %c0_98 = arith.constant 0 : index
    %c0_99 = arith.constant 0 : index
    %106 = vector.load %arg4[%c3_97, %c0_98, %c0_99] : memref<4x8x48xf32, #tpu.memory_space<vmem>>, vector<1x8x48xf32>
    %107 = vector.shape_cast %106 : vector<1x8x48xf32> to vector<8x48xf32>
    %108 = vector.shape_cast %105 : vector<8x48xf32> to vector<1x8x48xf32>
    tpu.vector_store %arg4[%c3_97, %c0_98, %c0_99], %108 {strides = array<i32>} : memref<4x8x48xf32, #tpu.memory_space<vmem>>, vector<1x8x48xf32>,
    return
  }
  func.func @transform_0(%arg0: i32) -> (i32, i32) {
    %c0_i32 = arith.constant 0 : i32
    %c0_i32_0 = arith.constant 0 : i32
    %c0_i32_1 = arith.constant 0 : i32
    return %c0_i32, %c0_i32_0 : i32, i32
  }
  func.func @transform_1(%arg0: i32) -> (i32, i32, i32) {
    %c0_i32 = arith.constant 0 : i32
    %c0_i32_0 = arith.constant 0 : i32
    %c0_i32_1 = arith.constant 0 : i32
    return %arg0, %c0_i32, %c0_i32_0 : i32, i32, i32
  }
  func.func @transform_2(%arg0: i32) -> (i32, i32, i32) {
    %c0_i32 = arith.constant 0 : i32
    %c0_i32_0 = arith.constant 0 : i32
    %c0_i32_1 = arith.constant 0 : i32
    return %arg0, %c0_i32, %c0_i32_0 : i32, i32, i32
  }
  func.func @transform_3(%arg0: i32) -> (i32, i32, i32) {
    %c0_i32 = arith.constant 0 : i32
    %c0_i32_0 = arith.constant 0 : i32
    %c0_i32_1 = arith.constant 0 : i32
    return %arg0, %c0_i32, %c0_i32_0 : i32, i32, i32
  }
}

</mosaic_0001>

<bundles_post_ra>
// kernel: tpu_custom_call.1
= control target key start
LH: loop header
LB: loop body
LE: loop exit
PB: predicated region body
PF: predicated region fallthrough
CT: control target
= control target key end

     0   :  { %vm66_vm0 = vcmask 130048   ;;  %s1554_s0 = inlined_call_operand.vmem [shape: bf16[96,16], index: 0, kind: input, shape index: {}]   ;;  %s1555_s1 = inlined_call_operand.vmem [shape: bf16[4,8,16], index: 1, kind: input, shape index: {}]   ;;  %s1556_s2 = inlined_call_operand.vmem [shape: bf16[4,16,8], index: 2, kind: input, shape index: {}]   ;;  %s1557_s3 = inlined_call_operand.hbm [shape: f32[4,8,48], index: 3, kind: output, shape index: {}]  }
   0x1   :  { %v1277_v0 = vld [vmem:[%s1556_s2] sm:$0xff]   ;;  %v1351_v2 = vld [vmem:[%s1554_s0 + $0x8] sm:$0xff]   ;;  %v1358_v3 = vld [vmem:[%s1554_s0 + $0x10] sm:$0xff]  }
   0x2   :  { %v1346_v1 = vld [vmem:[%s1554_s0] sm:$0xff]   ;;  %1188 = vmatprep.subr.bf16.mxu0 %v1277_v0 }
   0x3   :  { %1189 = vmatpush3.bf16.msra.mxu0 %v1277_v0  ;;  %1190 = vmatprep.mubr.msk.bf16.mxu0 %vm66_vm0, %v1346_v1 }
   0x6   :  { %1191 = vmatmul.mubr.msk.bf16.vlgmr.msra.gmra.mxu0 %vm66_vm0, %v1351_v2 }
   0x7   :  { %1194 = vmatprep.mubr.msk.bf16.mxu0 %vm66_vm0, %v1358_v3 }
   0x8   :  { %8 = vsyncpa [#allocation4], 0  ;;  %v1367_v4 = vld [vmem:[%s1554_s0 + $0x18] sm:$0xff]   ;;  %v1372_v5 = vld [vmem:[%s1554_s0 + $0x20] sm:$0xff]   ;;  %vm179_vm1 = vcmask 60416   ;;  %s1311_s26 = smov 8  }
   0x9   :  { %v1381_v6 = vld [vmem:[%s1554_s0 + $0x28] sm:$0xff]   ;;  %s1312_s0 = smov 24   ;;  %s1313_s27 = smov 16   ;;  %v1315_v30 = vmov 0.0   ;;  %vm1317_vm2 = vmmov 0   ;;  %vm193_vm3 = vcmask 126016  }
   0xa   :  { %s1314_s28 = smov 32   ;;  %1202 = vmatprep.subr.bf16.mxu1 %v1315_v30  ;;  %1222 = vmatprep.subr.bf16.mxu0 %v1315_v30  ;;  %s1316_s29 = smov 40   ;;  %vm207_vm4 = vcmask 191616   ;;  %vm221_vm5 = vcmask 257216   ;;  %vm235_vm6 = vcmask 322816   ;;  %vm249_vm7 = vcmask 388416  }
   0xb   :  { %1204 = vmatprep.mubr.msk.bf16.mxu1 %vm1317_vm2, %v1315_v30  ;;  %v1284_v44 = vld [vmem:[%s1556_s2 + $0x8] sm:$0xff]   ;;  %v252_v46 = vld [vmem:[%s1555_s1] sm:$0xf]  ;;  %vm306_vm8 = vcmask 392192   ;;  %s1318_s16 = smov [#allocation3]  }
   0xc   :  { %s994_s17 = sshll.u32 %s1318_s16, 4  ;;  %s995_s17 = int_to_ptr.vmem [resolvable:$true] %s994_s17 }
   0xd   :  { %s1289_s18 = scalar_lea.vmem %s995_s17, 512  ;;  %p1294_p1 = scmp.lt.s32.totalorder %s995_s17, %s995_s17 }
   0xe   :  { %1195 = vmatmul.mubr.msk.bf16.gmra.mxu0 %vm66_vm0, %v1367_v4  ;;  %p1290_p0 = scmp.ne.s32.totalorder %s995_s17, %s1289_s18  ;;  %p1295_p2 = scmp.lt.s32.totalorder %s1289_s18, %s1289_s18 }
   0xf   :  { %1198 = vmatprep.mubr.msk.bf16.mxu0 %vm66_vm0, %v1372_v5 }
  0x10   :  { %p1296_p3 = por %p1295_p2, %p1294_p1 }
  0x12   :  { %p1297_p4 = pnand %p1296_p3, %p1290_p0 }
  0x16   :  { %1199 = vmatmul.mubr.msk.bf16.gmra.mxu0 %vm66_vm0, %v1381_v6 }
  0x17   :  { %1224 = vmatprep.mubr.msk.bf16.mxu0 %vm1317_vm2, %v1315_v30 }
  0xc6   :  { %v1192_v7 = vpop.f32.mrf.mxu0 }
  0xc7   :  { %v1106_v8 = vpack.c.bf16 %v1192_v7, %v1192_v7 }
  0xc8   :  { %v119_v9 = vpop.f32.mrf.mxu0 }
  0xc9   :  { %v1104_v10 = vpack.c.bf16 %v119_v9, %v119_v9  ;;  %187 = vrot.lane.b32.xlu0 %v1106_v8, %s1311_s26 }
  0xca   :  { %v1193_v11 = vpop.f32.mrf.mxu0 }
  0xcb   :  { %180 = vst.msk [vmem:[#allocation2] sm:$0xf] %vm179_vm1, %v1104_v10  ;;  %v1107_v12 = vpack.c.bf16 %v1193_v11, %v1193_v11 }
  0xcc   :  { %v122_v13 = vpop.f32.mrf.mxu0 }
  0xcd   :  { %v1105_v14 = vpack.c.bf16 %v122_v13, %v122_v13  ;;  %189 = vrot.lane.b32.xlu0 %v1107_v12, %s1311_s26 }
  0xce   :  { %v1196_v15 = vpop.f32.mrf.mxu0 }
  0xcf   :  { %181 = vst.msk [vmem:[#allocation2 + $0x4] sm:$0xf] %vm179_vm1, %v1105_v14  ;;  %v1110_v16 = vpack.c.bf16 %v1196_v15, %v1196_v15 }
  0xd0   :  { %v135_v17 = vpop.f32.mrf.mxu0 }
  0xd1   :  { %v1108_v18 = vpack.c.bf16 %v135_v17, %v135_v17  ;;  %215 = vrot.lane.b32.xlu0 %v1110_v16, %s1312_s0 }
  0xd2   :  { %v1197_v19 = vpop.f32.mrf.mxu0 }
  0xd3   :  { %201 = vrot.lane.b32.xlu1 %v1108_v18, %s1313_s27  ;;  %v1111_v21 = vpack.c.bf16 %v1197_v19, %v1197_v19 }
  0xd4   :  { %v138_v20 = vpop.f32.mrf.mxu0 }
  0xd5   :  { %v1109_v24 = vpack.c.bf16 %v138_v20, %v138_v20 }
  0xd6   :  { %v1200_v22 = vpop.f32.mrf.mxu0 }
  0xd7   :  { %217 = vrot.lane.b32.xlu1 %v1111_v21, %s1312_s0  ;;  %v1114_v28 = vpack.c.bf16 %v1200_v22, %v1200_v22 }
  0xd8   :  { %v151_v23 = vpop.f32.mrf.mxu0 }
  0xd9   :  { %v1112_v25 = vpack.c.bf16 %v151_v23, %v151_v23 }
  0xda   :  { %v1201_v26 = vpop.f32.mrf.mxu0 }
  0xdb   :  { %203 = vrot.lane.b32.xlu1 %v1109_v24, %s1313_s27  ;;  %229 = vrot.lane.b32.xlu0 %v1112_v25, %s1314_s28  ;;  %v1115_v31 = vpack.c.bf16 %v1201_v26, %v1201_v26 }
  0xdc   :  { %v154_v27 = vpop.f32.mrf.mxu0 }
  0xdd   :  { %v1113_v29 = vpack.c.bf16 %v154_v27, %v154_v27 }
  0xdf   :  { %243 = vrot.lane.b32.xlu0 %v1114_v28, %s1316_s29  ;;  %231 = vrot.lane.b32.xlu1 %v1113_v29, %s1314_s28 }
  0xe3   :  { %245 = vrot.lane.b32.xlu1 %v1115_v31, %s1316_s29 }
 0x13b   :  { %v188_v32 = vpop.permute.xlu0 %187 }
 0x13c   :  { %194 = vst.msk [vmem:[#allocation2] sm:$0xf] %vm193_vm3, %v188_v32  ;;  %v1285_v32 = vld [vmem:[%s1556_s2 + $0x10] sm:$0xff]  }
 0x13f   :  { %v190_v33 = vpop.permute.xlu0 %189 }
 0x140   :  { %195 = vst.msk [vmem:[#allocation2 + $0x4] sm:$0xf] %vm193_vm3, %v190_v33 }
 0x143   :  { %v216_v35 = vpop.permute.xlu0 %215 }
 0x145   :  { %v202_v34 = vpop.permute.xlu1 %201 }
 0x146   :  { %208 = vst.msk [vmem:[#allocation2] sm:$0xf] %vm207_vm4, %v202_v34  ;;  %v1053_v34 = vld [vmem:[%s1555_s1 + $0x4] sm:$0xf] }
 0x147   :  { %222 = vst.msk [vmem:[#allocation2] sm:$0xf] %vm221_vm5, %v216_v35 }
 0x149   :  { %v218_v36 = vpop.permute.xlu1 %217 }
 0x14d   :  { %v204_v37 = vpop.permute.xlu1 %203  ;;  %v230_v38 = vpop.permute.xlu0 %229 }
 0x14e   :  { %209 = vst.msk [vmem:[#allocation2 + $0x4] sm:$0xf] %vm207_vm4, %v204_v37 }
 0x14f   :  { %236 = vst.msk [vmem:[#allocation2] sm:$0xf] %vm235_vm6, %v230_v38 }
 0x150   :  { %223 = vst.msk [vmem:[#allocation2 + $0x4] sm:$0xf] %vm221_vm5, %v218_v36 }
 0x151   :  { %v244_v39 = vpop.permute.xlu0 %243  ;;  %v232_v40 = vpop.permute.xlu1 %231 }
 0x152   :  { %250 = vst.msk [vmem:[#allocation2] sm:$0xf] %vm249_vm7, %v244_v39 }
 0x153   :  { %237 = vst.msk [vmem:[#allocation2 + $0x4] sm:$0xf] %vm235_vm6, %v232_v40 }
 0x155   :  { %v246_v41 = vpop.permute.xlu1 %245 }
 0x156   :  { %251 = vst.msk [vmem:[#allocation2 + $0x4] sm:$0xf] %vm249_vm7, %v246_v41 }
 0x159   :  { %v253_v42 = vld [vmem:[#allocation2] sm:$0xf] }
 0x15d   :  { %v254_v43 = vld [vmem:[#allocation2 + $0x4] sm:$0xf] }
 0x15e   :  { %v1030_v45 = vcombine.low %v253_v42, %v254_v43 }
 0x160   :  { %1203 = vmatpush3.bf16.msra.mxu1 %v1030_v45 }
 0x161   :  { %1208 = vmatprep.subr.bf16.mxu1 %v1284_v44 }
 0x163   :  { %1205 = vmatmul.mubr.msk.bf16.vlgmr.msra.gmra.mxu1 %vm66_vm0, %v252_v46 }
 0x164   :  { %1209 = vmatpush3.bf16.msra.mxu1 %v1284_v44  ;;  %1210 = vmatprep.mubr.msk.bf16.mxu1 %vm66_vm0, %v1346_v1 }
 0x165   :  { %1242 = vmatprep.subr.bf16.mxu1 %v1315_v30 }
 0x16b   :  { %1211 = vmatmul.mubr.msk.bf16.vlgmr.msra.gmra.mxu1 %vm66_vm0, %v1351_v2 }
 0x16c   :  { %1214 = vmatprep.mubr.msk.bf16.mxu1 %vm66_vm0, %v1358_v3 }
 0x173   :  { %1215 = vmatmul.mubr.msk.bf16.gmra.mxu1 %vm66_vm0, %v1367_v4 }
 0x174   :  { %1218 = vmatprep.mubr.msk.bf16.mxu1 %vm66_vm0, %v1372_v5 }
 0x17b   :  { %1219 = vmatmul.mubr.msk.bf16.gmra.mxu1 %vm66_vm0, %v1381_v6 }
 0x17c   :  { %1244 = vmatprep.mubr.msk.bf16.mxu1 %vm1317_vm2, %v1315_v30 }
 0x223   :  { %v298_v47 = vpop.f32.mrf.mxu1 }
 0x224   :  { %v304_v48 = vmax.f32 %v298_v47, 0.0 }
 0x225   :  { %v1206_v49 = vpop.f32.mrf.mxu1 }
 0x226   :  { %v305_v50 = vmin.f32 %v304_v48, 1.0 }
 0x227   :  { %v301_v51 = vpop.f32.mrf.mxu1 }
 0x228   :  { %307 = vst.msk [vmem:[#allocation3] sm:$0xff] %vm306_vm8, %v305_v50 }
 0x229   :  { %v1207_v52 = vpop.f32.mrf.mxu1 }
 0x22b   :  { %v1212_v53 = vpop.f32.mrf.mxu1 }
 0x22c   :  { %v1118_v54 = vpack.c.bf16 %v1212_v53, %v1212_v53 }
 0x22d   :  { %v351_v55 = vpop.f32.mrf.mxu1 }
 0x22e   :  { %v1116_v56 = vpack.c.bf16 %v351_v55, %v351_v55  ;;  %418 = vrot.lane.b32.xlu0 %v1118_v54, %s1311_s26 }
 0x22f   :  { %v1213_v57 = vpop.f32.mrf.mxu1 }
 0x230   :  { %411 = vst.msk [vmem:[#allocation2] sm:$0xf] %vm179_vm1, %v1116_v56  ;;  %v1119_v58 = vpack.c.bf16 %v1213_v57, %v1213_v57 }
 0x231   :  { %v354_v59 = vpop.f32.mrf.mxu1 }
 0x232   :  { %v1117_v60 = vpack.c.bf16 %v354_v59, %v354_v59  ;;  %420 = vrot.lane.b32.xlu1 %v1119_v58, %s1311_s26 }
 0x233   :  { %v1216_v61 = vpop.f32.mrf.mxu1 }
 0x234   :  { %412 = vst.msk [vmem:[#allocation2 + $0x4] sm:$0xf] %vm179_vm1, %v1117_v60  ;;  %v1122_v62 = vpack.c.bf16 %v1216_v61, %v1216_v61 }
 0x235   :  { %v367_v63 = vpop.f32.mrf.mxu1 }
 0x236   :  { %444 = vrot.lane.b32.xlu0 %v1122_v62, %s1312_s0  ;;  %v1120_v7 = vpack.c.bf16 %v367_v63, %v367_v63 }
 0x237   :  { %v1217_v0 = vpop.f32.mrf.mxu1 }
 0x238   :  { %v1123_v8 = vpack.c.bf16 %v1217_v0, %v1217_v0 }
 0x239   :  { %v370_v9 = vpop.f32.mrf.mxu1 }
 0x23a   :  { %431 = vrot.lane.b32.xlu0 %v1120_v7, %s1313_s27  ;;  %446 = vrot.lane.b32.xlu1 %v1123_v8, %s1312_s0  ;;  %v1121_v11 = vpack.c.bf16 %v370_v9, %v370_v9 }
 0x23b   :  { %v1220_v10 = vpop.f32.mrf.mxu1 }
 0x23c   :  { %v1126_v16 = vpack.c.bf16 %v1220_v10, %v1220_v10 }
 0x23d   :  { %v383_v12 = vpop.f32.mrf.mxu1 }
 0x23e   :  { %v1124_v13 = vpack.c.bf16 %v383_v12, %v383_v12  ;;  %433 = vrot.lane.b32.xlu1 %v1121_v11, %s1313_s27 }
 0x23f   :  { %v1221_v14 = vpop.f32.mrf.mxu1 }
 0x240   :  { %457 = vrot.lane.b32.xlu0 %v1124_v13, %s1314_s28  ;;  %v1127_v18 = vpack.c.bf16 %v1221_v14, %v1221_v14 }
 0x241   :  { %v386_v15 = vpop.f32.mrf.mxu1 }
 0x242   :  { %v1125_v17 = vpack.c.bf16 %v386_v15, %v386_v15 }
 0x244   :  { %470 = vrot.lane.b32.xlu0 %v1126_v16, %s1316_s29  ;;  %459 = vrot.lane.b32.xlu1 %v1125_v17, %s1314_s28  ;;  %v1287_v16 = vld [vmem:[%s1556_s2 + $0x18] sm:$0xff]  }
 0x248   :  { %472 = vrot.lane.b32.xlu1 %v1127_v18, %s1316_s29  ;;  %v1077_v18 = vld [vmem:[%s1555_s1 + $0x8] sm:$0xf] }
 0x2a0   :  { %v419_v19 = vpop.permute.xlu0 %418 }
 0x2a1   :  { %424 = vst.msk [vmem:[#allocation2] sm:$0xf] %vm193_vm3, %v419_v19 }
 0x2a4   :  { %v421_v20 = vpop.permute.xlu1 %420 }
 0x2a5   :  { %425 = vst.msk [vmem:[#allocation2 + $0x4] sm:$0xf] %vm193_vm3, %v421_v20 }
 0x2a8   :  { %v445_v21 = vpop.permute.xlu0 %444 }
 0x2ac   :  { %v432_v22 = vpop.permute.xlu0 %431  ;;  %v447_v23 = vpop.permute.xlu1 %446 }
 0x2ad   :  { %437 = vst.msk [vmem:[#allocation2] sm:$0xf] %vm207_vm4, %v432_v22 }
 0x2ae   :  { %450 = vst.msk [vmem:[#allocation2] sm:$0xf] %vm221_vm5, %v445_v21 }
 0x2b0   :  { %v434_v24 = vpop.permute.xlu1 %433 }
 0x2b1   :  { %438 = vst.msk [vmem:[#allocation2 + $0x4] sm:$0xf] %vm207_vm4, %v434_v24 }
 0x2b2   :  { %451 = vst.msk [vmem:[#allocation2 + $0x4] sm:$0xf] %vm221_vm5, %v447_v23  ;;  %v458_v25 = vpop.permute.xlu0 %457 }
 0x2b3   :  { %463 = vst.msk [vmem:[#allocation2] sm:$0xf] %vm235_vm6, %v458_v25 }
 0x2b6   :  { %v471_v26 = vpop.permute.xlu0 %470  ;;  %v460_v27 = vpop.permute.xlu1 %459 }
 0x2b7   :  { %476 = vst.msk [vmem:[#allocation2] sm:$0xf] %vm249_vm7, %v471_v26 }
 0x2b8   :  { %464 = vst.msk [vmem:[#allocation2 + $0x4] sm:$0xf] %vm235_vm6, %v460_v27 }
 0x2ba   :  { %v473_v28 = vpop.permute.xlu1 %472 }
 0x2bb   :  { %477 = vst.msk [vmem:[#allocation2 + $0x4] sm:$0xf] %vm249_vm7, %v473_v28 }
 0x2be   :  { %v480_v29 = vld [vmem:[#allocation2] sm:$0xf] }
 0x2c2   :  { %v481_v31 = vld [vmem:[#allocation2 + $0x4] sm:$0xf] }
 0x2c3   :  { %v1054_v33 = vcombine.low %v480_v29, %v481_v31 }
 0x2c5   :  { %1223 = vmatpush3.bf16.msra.mxu0 %v1054_v33 }
 0x2c6   :  { %1228 = vmatprep.subr.bf16.mxu0 %v1285_v32 }
 0x2c8   :  { %1225 = vmatmul.mubr.msk.bf16.vlgmr.msra.gmra.mxu0 %vm66_vm0, %v1053_v34 }
 0x2c9   :  { %1229 = vmatpush3.bf16.msra.mxu0 %v1285_v32  ;;  %1230 = vmatprep.mubr.msk.bf16.mxu0 %vm66_vm0, %v1346_v1 }
 0x2ca   :  { %1262 = vmatprep.subr.bf16.mxu0 %v1315_v30 }
 0x2d0   :  { %1231 = vmatmul.mubr.msk.bf16.vlgmr.msra.gmra.mxu0 %vm66_vm0, %v1351_v2 }
 0x2d1   :  { %1234 = vmatprep.mubr.msk.bf16.mxu0 %vm66_vm0, %v1358_v3 }
 0x2d8   :  { %1235 = vmatmul.mubr.msk.bf16.gmra.mxu0 %vm66_vm0, %v1367_v4 }
 0x2d9   :  { %1238 = vmatprep.mubr.msk.bf16.mxu0 %vm66_vm0, %v1372_v5 }
 0x2e0   :  { %1239 = vmatmul.mubr.msk.bf16.gmra.mxu0 %vm66_vm0, %v1381_v6 }
 0x2e1   :  { %1264 = vmatprep.mubr.msk.bf16.mxu0 %vm1317_vm2, %v1315_v30 }
 0x388   :  { %v525_v35 = vpop.f32.mrf.mxu0 }
 0x389   :  { %v531_v36 = vmax.f32 %v525_v35, 0.0 }
 0x38a   :  { %v1226_v37 = vpop.f32.mrf.mxu0 }
 0x38b   :  { %v532_v38 = vmin.f32 %v531_v36, 1.0 }
 0x38c   :  { %v528_v39 = vpop.f32.mrf.mxu0 }
 0x38d   :  { %534 = vst.msk [vmem:[#allocation3 + $0x8] sm:$0xff] %vm306_vm8, %v532_v38 }
 0x38e   :  { %v1227_v40 = vpop.f32.mrf.mxu0 }
 0x390   :  { %v1232_v41 = vpop.f32.mrf.mxu0 }
 0x391   :  { %v1130_v42 = vpack.c.bf16 %v1232_v41, %v1232_v41 }
 0x392   :  { %v578_v43 = vpop.f32.mrf.mxu0 }
 0x393   :  { %v1128_v44 = vpack.c.bf16 %v578_v43, %v578_v43  ;;  %645 = vrot.lane.b32.xlu0 %v1130_v42, %s1311_s26 }
 0x394   :  { %v1233_v45 = vpop.f32.mrf.mxu0 }
 0x395   :  { %638 = vst.msk [vmem:[#allocation2] sm:$0xf] %vm179_vm1, %v1128_v44  ;;  %v1131_v46 = vpack.c.bf16 %v1233_v45, %v1233_v45 }
 0x396   :  { %v581_v47 = vpop.f32.mrf.mxu0 }
 0x397   :  { %v1129_v30 = vpack.c.bf16 %v581_v47, %v581_v47  ;;  %647 = vrot.lane.b32.xlu1 %v1131_v46, %s1311_s26 }
 0x398   :  { %v1236_v48 = vpop.f32.mrf.mxu0 }
 0x399   :  { %639 = vst.msk [vmem:[#allocation2 + $0x4] sm:$0xf] %vm179_vm1, %v1129_v30  ;;  %v1134_v49 = vpack.c.bf16 %v1236_v48, %v1236_v48 }
 0x39a   :  { %v594_v50 = vpop.f32.mrf.mxu0 }
 0x39b   :  { %671 = vrot.lane.b32.xlu0 %v1134_v49, %s1312_s0  ;;  %v1132_v52 = vpack.c.bf16 %v594_v50, %v594_v50 }
 0x39c   :  { %v1237_v51 = vpop.f32.mrf.mxu0 }
 0x39d   :  { %v1135_v53 = vpack.c.bf16 %v1237_v51, %v1237_v51 }
 0x39e   :  { %v597_v54 = vpop.f32.mrf.mxu0 }
 0x39f   :  { %658 = vrot.lane.b32.xlu0 %v1132_v52, %s1313_s27  ;;  %673 = vrot.lane.b32.xlu1 %v1135_v53, %s1312_s0  ;;  %v1133_v56 = vpack.c.bf16 %v597_v54, %v597_v54  ;;  %v1101_v54 = vld [vmem:[%s1555_s1 + $0xc] sm:$0xf] }
 0x3a0   :  { %v1240_v55 = vpop.f32.mrf.mxu0 }
 0x3a1   :  { %v1138_v61 = vpack.c.bf16 %v1240_v55, %v1240_v55 }
 0x3a2   :  { %v610_v57 = vpop.f32.mrf.mxu0 }
 0x3a3   :  { %v1136_v58 = vpack.c.bf16 %v610_v57, %v610_v57  ;;  %660 = vrot.lane.b32.xlu1 %v1133_v56, %s1313_s27 }
 0x3a4   :  { %v1241_v59 = vpop.f32.mrf.mxu0 }
 0x3a5   :  { %684 = vrot.lane.b32.xlu0 %v1136_v58, %s1314_s28  ;;  %v1139_v63 = vpack.c.bf16 %v1241_v59, %v1241_v59 }
 0x3a6   :  { %v613_v60 = vpop.f32.mrf.mxu0 }
 0x3a7   :  { %v1137_v62 = vpack.c.bf16 %v613_v60, %v613_v60 }
 0x3a9   :  { %697 = vrot.lane.b32.xlu0 %v1138_v61, %s1316_s29  ;;  %686 = vrot.lane.b32.xlu1 %v1137_v62, %s1314_s28 }
 0x3ad   :  { %699 = vrot.lane.b32.xlu1 %v1139_v63, %s1316_s29 }
 0x405   :  { %v646_v0 = vpop.permute.xlu0 %645 }
 0x406   :  { %651 = vst.msk [vmem:[#allocation2] sm:$0xf] %vm193_vm3, %v646_v0 }
 0x409   :  { %v648_v7 = vpop.permute.xlu1 %647 }
 0x40a   :  { %652 = vst.msk [vmem:[#allocation2 + $0x4] sm:$0xf] %vm193_vm3, %v648_v7 }
 0x40d   :  { %v672_v8 = vpop.permute.xlu0 %671 }
 0x411   :  { %v659_v9 = vpop.permute.xlu0 %658  ;;  %v674_v10 = vpop.permute.xlu1 %673 }
 0x412   :  { %664 = vst.msk [vmem:[#allocation2] sm:$0xf] %vm207_vm4, %v659_v9 }
 0x413   :  { %677 = vst.msk [vmem:[#allocation2] sm:$0xf] %vm221_vm5, %v672_v8 }
 0x415   :  { %v661_v11 = vpop.permute.xlu1 %660 }
 0x416   :  { %665 = vst.msk [vmem:[#allocation2 + $0x4] sm:$0xf] %vm207_vm4, %v661_v11 }
 0x417   :  { %678 = vst.msk [vmem:[#allocation2 + $0x4] sm:$0xf] %vm221_vm5, %v674_v10  ;;  %v685_v12 = vpop.permute.xlu0 %684 }
 0x418   :  { %690 = vst.msk [vmem:[#allocation2] sm:$0xf] %vm235_vm6, %v685_v12 }
 0x41b   :  { %v698_v13 = vpop.permute.xlu0 %697  ;;  %v687_v14 = vpop.permute.xlu1 %686 }
 0x41c   :  { %703 = vst.msk [vmem:[#allocation2] sm:$0xf] %vm249_vm7, %v698_v13 }
 0x41d   :  { %691 = vst.msk [vmem:[#allocation2 + $0x4] sm:$0xf] %vm235_vm6, %v687_v14 }
 0x41f   :  { %v700_v15 = vpop.permute.xlu1 %699 }
 0x420   :  { %704 = vst.msk [vmem:[#allocation2 + $0x4] sm:$0xf] %vm249_vm7, %v700_v15 }
 0x427   :  { %v1286_v17 = vld [vmem:[#allocation2] sm:$0xff]  }
 0x428   :  { %1243 = vmatpush3.bf16.msra.mxu1 %v1286_v17 }
 0x429   :  { %1248 = vmatprep.subr.bf16.mxu1 %v1287_v16 }
 0x42b   :  { %1245 = vmatmul.mubr.msk.bf16.vlgmr.msra.gmra.mxu1 %vm66_vm0, %v1077_v18 }
 0x42c   :  { %1249 = vmatpush3.bf16.msra.mxu1 %v1287_v16  ;;  %1250 = vmatprep.mubr.msk.bf16.mxu1 %vm66_vm0, %v1346_v1 }
 0x433   :  { %1251 = vmatmul.mubr.msk.bf16.vlgmr.msra.gmra.mxu1 %vm66_vm0, %v1351_v2 }
 0x434   :  { %1254 = vmatprep.mubr.msk.bf16.mxu1 %vm66_vm0, %v1358_v3 }
 0x43b   :  { %1255 = vmatmul.mubr.msk.bf16.gmra.mxu1 %vm66_vm0, %v1367_v4 }
 0x43c   :  { %1258 = vmatprep.mubr.msk.bf16.mxu1 %vm66_vm0, %v1372_v5 }
 0x443   :  { %1259 = vmatmul.mubr.msk.bf16.gmra.mxu1 %vm66_vm0, %v1381_v6 }
 0x4eb   :  { %v752_v19 = vpop.f32.mrf.mxu1 }
 0x4ec   :  { %v758_v20 = vmax.f32 %v752_v19, 0.0 }
 0x4ed   :  { %v1246_v21 = vpop.f32.mrf.mxu1 }
 0x4ee   :  { %v759_v22 = vmin.f32 %v758_v20, 1.0 }
 0x4ef   :  { %v755_v1 = vpop.f32.mrf.mxu1 }
 0x4f0   :  { %761 = vst.msk [vmem:[#allocation3 + $0x10] sm:$0xff] %vm306_vm8, %v759_v22 }
 0x4f1   :  { %v1247_v2 = vpop.f32.mrf.mxu1 }
 0x4f3   :  { %v1252_v23 = vpop.f32.mrf.mxu1 }
 0x4f4   :  { %v1142_v24 = vpack.c.bf16 %v1252_v23, %v1252_v23 }
 0x4f5   :  { %v805_v3 = vpop.f32.mrf.mxu1 }
 0x4f6   :  { %v1140_v25 = vpack.c.bf16 %v805_v3, %v805_v3  ;;  %872 = vrot.lane.b32.xlu0 %v1142_v24, %s1311_s26 }
 0x4f7   :  { %v1253_v4 = vpop.f32.mrf.mxu1 }
 0x4f8   :  { %865 = vst.msk [vmem:[#allocation2] sm:$0xf] %vm179_vm1, %v1140_v25  ;;  %v1143_v5 = vpack.c.bf16 %v1253_v4, %v1253_v4 }
 0x4f9   :  { %v808_v26 = vpop.f32.mrf.mxu1 }
 0x4fa   :  { %v1141_v6 = vpack.c.bf16 %v808_v26, %v808_v26  ;;  %874 = vrot.lane.b32.xlu1 %v1143_v5, %s1311_s26 }
 0x4fb   :  { %v1256_v27 = vpop.f32.mrf.mxu1 }
 0x4fc   :  { %866 = vst.msk [vmem:[#allocation2 + $0x4] sm:$0xf] %vm179_vm1, %v1141_v6  ;;  %v1146_v28 = vpack.c.bf16 %v1256_v27, %v1256_v27 }
 0x4fd   :  { %v821_v29 = vpop.f32.mrf.mxu1 }
 0x4fe   :  { %898 = vrot.lane.b32.xlu0 %v1146_v28, %s1312_s0  ;;  %v1144_v32 = vpack.c.bf16 %v821_v29, %v821_v29 }
 0x4ff   :  { %v1257_v31 = vpop.f32.mrf.mxu1 }
 0x500   :  { %v1147_v33 = vpack.c.bf16 %v1257_v31, %v1257_v31 }
 0x501   :  { %v824_v34 = vpop.f32.mrf.mxu1 }
 0x502   :  { %885 = vrot.lane.b32.xlu0 %v1144_v32, %s1313_s27  ;;  %900 = vrot.lane.b32.xlu1 %v1147_v33, %s1312_s0  ;;  %v1145_v36 = vpack.c.bf16 %v824_v34, %v824_v34 }
 0x503   :  { %v1260_v35 = vpop.f32.mrf.mxu1 }
 0x504   :  { %v1150_v41 = vpack.c.bf16 %v1260_v35, %v1260_v35 }
 0x505   :  { %v837_v37 = vpop.f32.mrf.mxu1 }
 0x506   :  { %v1148_v38 = vpack.c.bf16 %v837_v37, %v837_v37  ;;  %887 = vrot.lane.b32.xlu1 %v1145_v36, %s1313_s27 }
 0x507   :  { %v1261_v39 = vpop.f32.mrf.mxu1 }
 0x508   :  { %911 = vrot.lane.b32.xlu0 %v1148_v38, %s1314_s28  ;;  %v1151_v43 = vpack.c.bf16 %v1261_v39, %v1261_v39 }
 0x509   :  { %v840_v40 = vpop.f32.mrf.mxu1 }
 0x50a   :  { %v1149_v42 = vpack.c.bf16 %v840_v40, %v840_v40 }
 0x50c   :  { %924 = vrot.lane.b32.xlu0 %v1150_v41, %s1316_s29  ;;  %913 = vrot.lane.b32.xlu1 %v1149_v42, %s1314_s28 }
 0x510   :  { %926 = vrot.lane.b32.xlu1 %v1151_v43, %s1316_s29 }
 0x568   :  { %v873_v44 = vpop.permute.xlu0 %872 }
 0x569   :  { %878 = vst.msk [vmem:[#allocation2] sm:$0xf] %vm193_vm3, %v873_v44 }
 0x56c   :  { %v875_v45 = vpop.permute.xlu1 %874 }
 0x56d   :  { %879 = vst.msk [vmem:[#allocation2 + $0x4] sm:$0xf] %vm193_vm3, %v875_v45 }
 0x570   :  { %v899_v46 = vpop.permute.xlu0 %898 }
 0x574   :  { %v886_v47 = vpop.permute.xlu0 %885  ;;  %v901_v30 = vpop.permute.xlu1 %900 }
 0x575   :  { %891 = vst.msk [vmem:[#allocation2] sm:$0xf] %vm207_vm4, %v886_v47 }
 0x576   :  { %904 = vst.msk [vmem:[#allocation2] sm:$0xf] %vm221_vm5, %v899_v46 }
 0x578   :  { %v888_v48 = vpop.permute.xlu1 %887 }
 0x579   :  { %892 = vst.msk [vmem:[#allocation2 + $0x4] sm:$0xf] %vm207_vm4, %v888_v48 }
 0x57a   :  { %905 = vst.msk [vmem:[#allocation2 + $0x4] sm:$0xf] %vm221_vm5, %v901_v30  ;;  %v912_v49 = vpop.permute.xlu0 %911 }
 0x57b   :  { %917 = vst.msk [vmem:[#allocation2] sm:$0xf] %vm235_vm6, %v912_v49 }
 0x57e   :  { %v925_v50 = vpop.permute.xlu0 %924  ;;  %v914_v51 = vpop.permute.xlu1 %913 }
 0x57f   :  { %930 = vst.msk [vmem:[#allocation2] sm:$0xf] %vm249_vm7, %v925_v50 }
 0x580   :  { %918 = vst.msk [vmem:[#allocation2 + $0x4] sm:$0xf] %vm235_vm6, %v914_v51 }
 0x582   :  { %v927_v52 = vpop.permute.xlu1 %926 }
 0x583   :  { %931 = vst.msk [vmem:[#allocation2 + $0x4] sm:$0xf] %vm249_vm7, %v927_v52 }
 0x58a   :  { %v1288_v53 = vld [vmem:[#allocation2] sm:$0xff]  }
 0x58b   :  { %1263 = vmatpush3.bf16.msra.mxu0 %v1288_v53 }
 0x58e   :  { %1265 = vmatmul.mubr.msk.bf16.vlgmr.msra.gmra.mxu0 %vm66_vm0, %v1101_v54 }
 0x64e   :  { %v979_v55 = vpop.f32.mrf.mxu0 }
 0x64f   :  { %v985_v56 = vmax.f32 %v979_v55, 0.0 }
 0x650   :  { %v1266_v57 = vpop.f32.mrf.mxu0 }
 0x651   :  { %v986_v58 = vmin.f32 %v985_v56, 1.0 }
 0x652   :  { %v982_v59 = vpop.f32.mrf.mxu0 }
 0x653   :  { %988 = vst.msk [vmem:[#allocation3 + $0x18] sm:$0xff] %vm306_vm8, %v986_v58 }
 0x654   :  { %v1267_v60 = vpop.f32.mrf.mxu0 }
 0x655   :  { %1300 = shalt.err (!%p1297_p4)
}
 0x656   :  { %s1319_s1 = smov 128  }
 0x657   :  { %1000 = dma.vmem_to_hbm [thread:$0]  %s995_s17, 512, %s1557_s3, [#allocation4], %s1319_s1, %s1319_s1, %s1311_s26  }
 0x658   :  { %1309 = dma.done.wait [#allocation4], 512  }
 0x659   :  { %1310 = vsyncadd [#allocation4], 4294966784 }
 0x65a   :  { %1004 = vsyncpa [#allocation4], 1 }

</bundles_post_ra>
